<compile_context>
chip_gen: v7x
topology: tpu7x:2x2x1
jax: 0.10.0
libtpu: 0.0.40
codegen_flags: <defaults>
</compile_context>

<pallas_src>
import jax
import jax.numpy as jnp
from jax.experimental import pallas as pl
from jax.experimental.pallas import tpu as pltpu


def _round_up(x, m):
    return ((x + m - 1) // m) * m


def mlp_kernel(x_ref, w1_ref, b1_ref, w2_ref, b2_ref, o_ref):
    # hidden = relu(x @ W1t + b1); bf16 operands, f32 accumulation on the MXU.
    h = jnp.dot(x_ref[...], w1_ref[...], preferred_element_type=jnp.float32)
    h = jnp.maximum(h + b1_ref[...], 0.0)

    # logits = hidden @ W2t + b2  (padded output lanes carry bias = -1e30)
    logits = jnp.dot(h.astype(w2_ref.dtype), w2_ref[...],
                     preferred_element_type=jnp.float32)
    logits = logits + b2_ref[...]

    # softmax over the output-class axis (== F.softmax(x, dim=1) for 2-D input)
    m = jnp.max(logits, axis=-1, keepdims=True)
    e = jnp.exp(logits - m)
    denom = jnp.sum(e, axis=-1, keepdims=True)
    o_ref[...] = (e * pl.reciprocal(denom, approx=True)).astype(o_ref.dtype)


def prepare_params(w1, b1, w2, b2, compute_dtype=jnp.bfloat16):
    """One-time prep (outside the per-step forward): transpose PyTorch-layout
    weights to (in, out), pad all dims to multiples of 128, cast to bf16."""
    n_hidden, n_feature = w1.shape
    n_output = w2.shape[0]
    F_pad = _round_up(n_feature, 128)
    H_pad = _round_up(n_hidden, 128)
    O_pad = _round_up(n_output, 128)

    w1t = jnp.pad(jnp.transpose(w1),
                  ((0, F_pad - n_feature), (0, H_pad - n_hidden))).astype(compute_dtype)
    w2t = jnp.pad(jnp.transpose(w2),
                  ((0, H_pad - n_hidden), (0, O_pad - n_output))).astype(compute_dtype)
    b1p = jnp.pad(b1.astype(jnp.float32), (0, H_pad - n_hidden)).reshape(1, H_pad)
    # Padded output lanes get a huge negative bias so exp() of them is exactly 0
    # and the softmax denominator is not contaminated.
    b2p = jnp.pad(b2.astype(jnp.float32), (0, O_pad - n_output),
                  constant_values=-1e30).reshape(1, O_pad)

    return dict(w1t=w1t, b1=b1p, w2t=w2t, b2=b2p,
                n_feature=n_feature, n_output=n_output)


def _vmem_limit_bytes(TB, F, H, O, compute_dtype):
    isize = jnp.dtype(compute_dtype).itemsize
    weights = (F * H + H * O) * isize + (H + O) * 4
    io_tiles = 2 * TB * F * isize + 2 * TB * O * 4      # double-buffered x / out tiles
    scratch = TB * H * 4 + 4 * TB * O * 4               # hidden + softmax temps (f32)
    est = 2 * (weights + io_tiles + scratch)            # headroom (weight dbl-buf etc.)
    # Stay comfortably under v7x's 64 MiB physical VMEM; also covers v5e's
    # small 16 MiB default scoped limit when TB is large.
    return int(min(max(est, 8 << 20), 48 << 20))


def mlp_forward(x, params, *, tb=512):
    """x: (B, n_feature) float.  Returns softmax probabilities (B, n_output) f32."""
    B, n_feature = x.shape
    assert n_feature == params["n_feature"]
    F_pad, H_pad = params["w1t"].shape
    O_pad = params["w2t"].shape[1]
    n_output = params["n_output"]
    compute_dtype = params["w1t"].dtype

    # Largest batch tile that fits comfortably; multiple of 8 for sublane tiling.
    TB = min(tb, _round_up(B, 8))
    B_pad = _round_up(B, TB)

    x_pad = jnp.pad(x, ((0, B_pad - B), (0, F_pad - n_feature))).astype(compute_dtype)

    out = pl.pallas_call(
        mlp_kernel,
        out_shape=jax.ShapeDtypeStruct((B_pad, O_pad), jnp.float32),
        grid=(B_pad // TB,),
        in_specs=[
            pl.BlockSpec((TB, F_pad), lambda i: (i, 0)),     # x tile (pipelined)
            pl.BlockSpec((F_pad, H_pad), lambda i: (0, 0)),  # W1t resident
            pl.BlockSpec((1, H_pad), lambda i: (0, 0)),      # b1 resident
            pl.BlockSpec((H_pad, O_pad), lambda i: (0, 0)),  # W2t resident
            pl.BlockSpec((1, O_pad), lambda i: (0, 0)),      # b2 resident
        ],
        out_specs=pl.BlockSpec((TB, O_pad), lambda i: (i, 0)),
        compiler_params=pltpu.CompilerParams(
            dimension_semantics=("parallel",),
            vmem_limit_bytes=_vmem_limit_bytes(TB, F_pad, H_pad, O_pad, compute_dtype),
        ),
    )(x_pad, params["w1t"], params["b1"], params["w2t"], params["b2"])

    # Strip batch / output-lane padding.
    return out[:B, :n_output]


if __name__ == "__main__":
    # Shapes implied by MLP(n_feature, n_hidden, n_output) acting on (batch, n_feature).
    batch, n_feature, n_hidden, n_output = 8, 16, 32, 8

    key = jax.random.PRNGKey(0)
    kx, kw1, kb1, kw2, kb2 = jax.random.split(key, 5)

    x = jax.random.normal(kx, (batch, n_feature), dtype=jnp.float32)
    # PyTorch Linear parameter shapes: weight (out, in), bias (out,).
    w1 = jax.random.normal(kw1, (n_hidden, n_feature), dtype=jnp.float32) * 0.1
    b1 = jax.random.normal(kb1, (n_hidden,), dtype=jnp.float32) * 0.1
    w2 = jax.random.normal(kw2, (n_output, n_hidden), dtype=jnp.float32) * 0.1
    b2 = jax.random.normal(kb2, (n_output,), dtype=jnp.float32) * 0.1

    # One-time parameter prep (transpose + pad + bf16 cast), reused every step.
    params = prepare_params(w1, b1, w2, b2)
    fwd = jax.jit(lambda xx: mlp_forward(xx, params))

    out = jax.block_until_ready(fwd(x))

    # Reference in plain f32 JAX (same math as the PyTorch forward).
    ref_h = jnp.maximum(x @ w1.T + b1, 0.0)
    ref = jax.nn.softmax(ref_h @ w2.T + b2, axis=1)

    assert out.shape == (batch, n_output)
    # bf16 MXU operands + approx reciprocal -> relaxed tolerances.
    assert jnp.allclose(jnp.sum(out, axis=1), 1.0, atol=5e-3)
    assert jnp.allclose(out, ref, atol=3e-2, rtol=3e-2)

    print("KERNEL_OK")
</pallas_src>

<mosaic_0001>
module attributes {stable_mosaic.version = 11 : i64} {
  func.func @mlp_kernel(%arg0: i32, %arg1: memref<8x128xbf16, #tpu.memory_space<vmem>>, %arg2: memref<128x128xbf16, #tpu.memory_space<vmem>>, %arg3: memref<1x128xf32, #tpu.memory_space<vmem>>, %arg4: memref<128x128xbf16, #tpu.memory_space<vmem>>, %arg5: memref<1x128xf32, #tpu.memory_space<vmem>>, %arg6: memref<8x128xf32, #tpu.memory_space<vmem>>) attributes {dimension_semantics = [#tpu.dimension_semantics<parallel>], iteration_bounds = array<i64: 1>, scalar_prefetch = 0 : i64, scratch_operands = 0 : i64, tpu.core_type = #tpu.core_type<tc>, window_params = [{transform_indices = @transform_0, window_bounds = array<i64: 8, 128>}, {pipeline_mode = #tpu.pipeline_mode<synchronous>, transform_indices = @transform_1, window_bounds = array<i64: 128, 128>}, {pipeline_mode = #tpu.pipeline_mode<synchronous>, transform_indices = @transform_2, window_bounds = array<i64: 1, 128>}, {pipeline_mode = #tpu.pipeline_mode<synchronous>, transform_indices = @transform_3, window_bounds = array<i64: 128, 128>}, {pipeline_mode = #tpu.pipeline_mode<synchronous>, transform_indices = @transform_4, window_bounds = array<i64: 1, 128>}, {transform_indices = @transform_5, window_bounds = array<i64: 8, 128>}]} {
    %c0 = arith.constant 0 : index
    %c0_0 = arith.constant 0 : index
    %0 = vector.load %arg1[%c0, %c0_0] : memref<8x128xbf16, #tpu.memory_space<vmem>>, vector<8x128xbf16>
    %c0_1 = arith.constant 0 : index
    %c0_2 = arith.constant 0 : index
    %1 = vector.load %arg2[%c0_1, %c0_2] : memref<128x128xbf16, #tpu.memory_space<vmem>>, vector<128x128xbf16>
    %cst = arith.constant dense<0.000000e+00> : vector<8x128xf32>
    %2 = tpu.matmul %0, %1, %cst {dimension_numbers = #tpu.dot_dimension_numbers<[1], [0], [0], [1], [0, 0, 1, 1], [], []>} : vector<8x128xbf16>, vector<128x128xbf16>, vector<8x128xf32> -> vector<8x128xf32>
    %c0_3 = arith.constant 0 : index
    %c0_4 = arith.constant 0 : index
    %3 = vector.load %arg3[%c0_3, %c0_4] : memref<1x128xf32, #tpu.memory_space<vmem>>, vector<1x128xf32>
    %4 = vector.broadcast %3 : vector<1x128xf32> to vector<8x128xf32>
    %5 = arith.addf %2, %4 : vector<8x128xf32>
    %cst_5 = arith.constant 0.000000e+00 : f32
    %6 = vector.broadcast %cst_5 : f32 to vector<8x128xf32>
    %7 = arith.maximumf %5, %6 : vector<8x128xf32>
    %8 = arith.truncf %7 : vector<8x128xf32> to vector<8x128xbf16>
    %c0_6 = arith.constant 0 : index
    %c0_7 = arith.constant 0 : index
    %9 = vector.load %arg4[%c0_6, %c0_7] : memref<128x128xbf16, #tpu.memory_space<vmem>>, vector<128x128xbf16>
    %cst_8 = arith.constant dense<0.000000e+00> : vector<8x128xf32>
    %10 = tpu.matmul %8, %9, %cst_8 {dimension_numbers = #tpu.dot_dimension_numbers<[1], [0], [0], [1], [0, 0, 1, 1], [], []>} : vector<8x128xbf16>, vector<128x128xbf16>, vector<8x128xf32> -> vector<8x128xf32>
    %c0_9 = arith.constant 0 : index
    %c0_10 = arith.constant 0 : index
    %11 = vector.load %arg5[%c0_9, %c0_10] : memref<1x128xf32, #tpu.memory_space<vmem>>, vector<1x128xf32>
    %12 = vector.broadcast %11 : vector<1x128xf32> to vector<8x128xf32>
    %13 = arith.addf %10, %12 : vector<8x128xf32>
    %cst_11 = arith.constant dense<0xFF800000> : vector<8xf32>
    %14 = vector.multi_reduction <maximumf>, %13, %cst_11 [1] : vector<8x128xf32> to vector<8xf32>
    %15 = vector.shape_cast %14 : vector<8xf32> to vector<8x1xf32>
    %16 = vector.broadcast %15 : vector<8x1xf32> to vector<8x128xf32>
    %17 = arith.subf %13, %16 : vector<8x128xf32>
    %18 = math.exp %17 : vector<8x128xf32>
    %cst_12 = arith.constant dense<0.000000e+00> : vector<8xf32>
    %19 = vector.multi_reduction <add>, %18, %cst_12 [1] : vector<8x128xf32> to vector<8xf32>
    %20 = vector.shape_cast %19 : vector<8xf32> to vector<8x1xf32>
    %21 = tpu.reciprocal %20 {approx = true} : vector<8x1xf32> -> vector<8x1xf32>
    %22 = vector.broadcast %21 : vector<8x1xf32> to vector<8x128xf32>
    %23 = arith.mulf %18, %22 : vector<8x128xf32>
    %c0_13 = arith.constant 0 : index
    %c0_14 = arith.constant 0 : index
    %24 = vector.load %arg6[%c0_13, %c0_14] : memref<8x128xf32, #tpu.memory_space<vmem>>, vector<8x128xf32>
    tpu.vector_store %arg6[%c0_13, %c0_14], %23 {strides = array<i32>} : memref<8x128xf32, #tpu.memory_space<vmem>>, vector<8x128xf32>,
    return
  }
  func.func @transform_0(%arg0: i32) -> (i32, i32) {
    %c0_i32 = arith.constant 0 : i32
    %c0_i32_0 = arith.constant 0 : i32
    return %arg0, %c0_i32 : i32, i32
  }
  func.func @transform_1(%arg0: i32) -> (i32, i32) {
    %c0_i32 = arith.constant 0 : i32
    %c0_i32_0 = arith.constant 0 : i32
    %c0_i32_1 = arith.constant 0 : i32
    return %c0_i32, %c0_i32_0 : i32, i32
  }
  func.func @transform_2(%arg0: i32) -> (i32, i32) {
    %c0_i32 = arith.constant 0 : i32
    %c0_i32_0 = arith.constant 0 : i32
    %c0_i32_1 = arith.constant 0 : i32
    return %c0_i32, %c0_i32_0 : i32, i32
  }
  func.func @transform_3(%arg0: i32) -> (i32, i32) {
    %c0_i32 = arith.constant 0 : i32
    %c0_i32_0 = arith.constant 0 : i32
    %c0_i32_1 = arith.constant 0 : i32
    return %c0_i32, %c0_i32_0 : i32, i32
  }
  func.func @transform_4(%arg0: i32) -> (i32, i32) {
    %c0_i32 = arith.constant 0 : i32
    %c0_i32_0 = arith.constant 0 : i32
    %c0_i32_1 = arith.constant 0 : i32
    return %c0_i32, %c0_i32_0 : i32, i32
  }
  func.func @transform_5(%arg0: i32) -> (i32, i32) {
    %c0_i32 = arith.constant 0 : i32
    %c0_i32_0 = arith.constant 0 : i32
    return %arg0, %c0_i32 : i32, i32
  }
}

</mosaic_0001>

<bundles_post_ra>
// kernel: _lambda_.1
= control target key start
LH: loop header
LB: loop body
LE: loop exit
PB: predicated region body
PF: predicated region fallthrough
CT: control target
= control target key end

     0   :  { %10 = vsyncpa [#allocation3], 0  ;;  %s558_s0 = inlined_call_operand.vmem [shape: bf16[8,128], index: 0, kind: input, shape index: {}]   ;;  %s559_s1 = inlined_call_operand.hbm [shape: bf16[128,128], index: 1, kind: input, shape index: {}]   ;;  %s560_s2 = inlined_call_operand.vmem [shape: f32[1,128], index: 2, kind: input, shape index: {}]   ;;  %s561_s3 = inlined_call_operand.hbm [shape: bf16[128,128], index: 3, kind: input, shape index: {}]   ;;  %s562_s4 = inlined_call_operand.vmem [shape: f32[1,128], index: 4, kind: input, shape index: {}]   ;;  %s563_s5 = inlined_call_operand.hbm [shape: f32[8,128], index: 5, kind: output, shape index: {}]  }
   0x1   :  { %11 = vsyncpa [#allocation6], 0 }
   0x2   :  { %12 = vsyncpa [#allocation4], 0  ;;  %s476_s18 = smov [#allocation2]   ;;  %s404_s22 = scalar_lea.hbm %s559_s1, 1024 }
   0x3   :  { %s20_s19 = sshll.u32 %s476_s18, 4  ;;  %p405_p0 = scmp.ne.s32.totalorder %s559_s1, %s404_s22  ;;  %s21_s19 = int_to_ptr.vmem [resolvable:$true] %s20_s19 }
   0x4   :  { %p408_p1 = scmp.lt.u32.totalorder %s404_s22, %s559_s1 }
   0x6   :  { %p410_p2 = pnand %p408_p1, %p405_p0 }
   0x8   :  { %413 = shalt.err (!%p410_p2)
}
   0x9   :  { %s414_s27 = scalar_lea.vmem %s21_s19, 1024  ;;  %p419_p4 = scmp.lt.s32.totalorder %s21_s19, %s21_s19 }
   0xa   :  { %p415_p3 = scmp.ne.s32.totalorder %s21_s19, %s414_s27  ;;  %p420_p5 = scmp.lt.s32.totalorder %s414_s27, %s414_s27 }
   0xc   :  { %p421_p6 = por %p420_p5, %p419_p4 }
   0xe   :  { %p422_p7 = pnand %p421_p6, %p415_p3 }
  0x10   :  { %425 = shalt.err (!%p422_p7)
}
  0x11   :  { %s477_s28 = smov 64   ;;  %s478_s29 = smov 4  }
  0x12   :  { %26 = dma.hbm_to_vmem [thread:$0]  %s559_s1, 1024, %s21_s19, [#allocation3], %s477_s28, %s477_s28, %s478_s29  }
  0x13   :  { %s479_s7 = smov [#allocation5]   ;;  %s426_s11 = scalar_lea.hbm %s561_s3, 1024 }
  0x14   :  { %s34_s8 = sshll.u32 %s479_s7, 4  ;;  %p427_p8 = scmp.ne.s32.totalorder %s561_s3, %s426_s11  ;;  %s35_s8 = int_to_ptr.vmem [resolvable:$true] %s34_s8 }
  0x15   :  { %p430_p9 = scmp.lt.u32.totalorder %s426_s11, %s561_s3 }
  0x17   :  { %p432_p10 = pnand %p430_p9, %p427_p8 }
  0x19   :  { %435 = shalt.err (!%p432_p10)
}
  0x1a   :  { %s436_s16 = scalar_lea.vmem %s35_s8, 1024  ;;  %p441_p12 = scmp.lt.s32.totalorder %s35_s8, %s35_s8 }
  0x1b   :  { %p437_p11 = scmp.ne.s32.totalorder %s35_s8, %s436_s16  ;;  %p442_p13 = scmp.lt.s32.totalorder %s436_s16, %s436_s16 }
  0x1d   :  { %p443_p0 = por %p442_p13, %p441_p12 }
  0x1f   :  { %p444_p1 = pnand %p443_p0, %p437_p11 }
  0x21   :  { %447 = shalt.err (!%p444_p1)
}
  0x22   :  { %40 = dma.hbm_to_vmem [thread:$0]  %s561_s3, 1024, %s35_s8, [#allocation6], %s477_s28, %s477_s28, %s478_s29  }
  0x23   :  { %470 = dma.done.wait [#allocation3], 1024  }
  0x24   :  { %471 = vsyncadd [#allocation3], 4294966272 }
  0x25   :  { %472 = dma.done.wait [#allocation6], 1024  }
  0x26   :  { %473 = vsyncadd [#allocation6], 4294966272  ;;  %v480_v0 = vmov 0.0   ;;  %vm481_vm0 = vmmov 0   ;;  %v384_v1 = vld [vmem:[#allocation2] sm:$0xff]   ;;  %v385_v2 = vld [vmem:[#allocation2 + $0x8] sm:$0xff]  }
  0x27   :  { %337 = vmatprep.subr.bf16.mxu0 %v480_v0  ;;  %353 = vmatprep.mubr.msk.bf16.mxu0 %vm481_vm0, %v480_v0  ;;  %v386_v3 = vld [vmem:[#allocation2 + $0x10] sm:$0xff]   ;;  %v392_v4 = vld [vmem:[#allocation5] sm:$0xff]   ;;  %v387_v5 = vld [vmem:[#allocation2 + $0x18] sm:$0xff]  }
  0x28   :  { %357 = vmatprep.subr.bf16.mxu1 %v480_v0  ;;  %373 = vmatprep.mubr.msk.bf16.mxu1 %vm481_vm0, %v480_v0  ;;  %v393_v6 = vld [vmem:[#allocation5 + $0x8] sm:$0xff]   ;;  %v388_v7 = vld [vmem:[#allocation2 + $0x20] sm:$0xff]   ;;  %v394_v8 = vld [vmem:[#allocation5 + $0x10] sm:$0xff]  }
  0x29   :  { %338 = vmatpush3.bf16.msra.mxu0 %v384_v1  ;;  %358 = vmatpush3.bf16.msra.mxu1 %v392_v4  ;;  %v389_v9 = vld [vmem:[#allocation2 + $0x28] sm:$0xff]   ;;  %v395_v10 = vld [vmem:[#allocation5 + $0x18] sm:$0xff]   ;;  %v390_v11 = vld [vmem:[#allocation2 + $0x30] sm:$0xff]  }
  0x2a   :  { %339 = vmatprep.subr.bf16.mxu0 %v480_v0  ;;  %359 = vmatprep.subr.bf16.mxu1 %v480_v0  ;;  %v396_v12 = vld [vmem:[#allocation5 + $0x20] sm:$0xff]   ;;  %v391_v13 = vld [vmem:[#allocation2 + $0x38] sm:$0xff]   ;;  %v397_v14 = vld [vmem:[#allocation5 + $0x28] sm:$0xff]  }
  0x2b   :  { %v50_v15 = vld [vmem:[%s558_s0] sm:$0xf]  ;;  %v398_v16 = vld [vmem:[#allocation5 + $0x30] sm:$0xff]   ;;  %v399_v17 = vld [vmem:[#allocation5 + $0x38] sm:$0xff]  }
  0x2c   :  { %v301_v18 = vld [vmem:[%s560_s2] ss:$0 sm:$0xff]  ;;  %s482_s2 = smov [#allocation7]  }
  0x2d   :  { %340 = vmatpush3.bf16.msra.mxu0 %v385_v2  ;;  %360 = vmatpush3.bf16.msra.mxu1 %v393_v6  ;;  %v310_v26 = vld [vmem:[%s562_s4] ss:$0 sm:$0xff]  ;;  %s291_s22 = sshll.u32 %s482_s2, 4  ;;  %s292_s22 = int_to_ptr.vmem [resolvable:$true] %s291_s22 }
  0x2e   :  { %341 = vmatprep.subr.bf16.mxu0 %v480_v0  ;;  %361 = vmatprep.subr.bf16.mxu1 %v480_v0  ;;  %s448_s4 = scalar_lea.vmem %s292_s22, 128  ;;  %p453_p3 = scmp.lt.s32.totalorder %s292_s22, %s292_s22 }
  0x2f   :  { %p449_p2 = scmp.ne.s32.totalorder %s292_s22, %s448_s4  ;;  %p454_p4 = scmp.lt.s32.totalorder %s448_s4, %s448_s4 }
  0x31   :  { %342 = vmatpush3.bf16.msra.mxu0 %v386_v3  ;;  %362 = vmatpush3.bf16.msra.mxu1 %v394_v8  ;;  %p455_p5 = por %p454_p4, %p453_p3 }
  0x32   :  { %343 = vmatprep.subr.bf16.mxu0 %v480_v0  ;;  %363 = vmatprep.subr.bf16.mxu1 %v480_v0 }
  0x33   :  { %p456_p6 = pnand %p455_p5, %p449_p2 }
  0x35   :  { %344 = vmatpush3.bf16.msra.mxu0 %v387_v5  ;;  %364 = vmatpush3.bf16.msra.mxu1 %v395_v10 }
  0x36   :  { %345 = vmatprep.subr.bf16.mxu0 %v480_v0  ;;  %365 = vmatprep.subr.bf16.mxu1 %v480_v0 }
  0x39   :  { %346 = vmatpush3.bf16.msra.mxu0 %v388_v7  ;;  %366 = vmatpush3.bf16.msra.mxu1 %v396_v12 }
  0x3a   :  { %347 = vmatprep.subr.bf16.mxu0 %v480_v0  ;;  %367 = vmatprep.subr.bf16.mxu1 %v480_v0 }
  0x3d   :  { %348 = vmatpush3.bf16.msra.mxu0 %v389_v9  ;;  %368 = vmatpush3.bf16.msra.mxu1 %v397_v14 }
  0x3e   :  { %349 = vmatprep.subr.bf16.mxu0 %v480_v0  ;;  %369 = vmatprep.subr.bf16.mxu1 %v480_v0 }
  0x41   :  { %350 = vmatpush3.bf16.msra.mxu0 %v390_v11  ;;  %370 = vmatpush3.bf16.msra.mxu1 %v398_v16 }
  0x42   :  { %351 = vmatprep.subr.bf16.mxu0 %v480_v0  ;;  %371 = vmatprep.subr.bf16.mxu1 %v480_v0 }
  0x45   :  { %352 = vmatpush3.bf16.msra.mxu0 %v391_v13  ;;  %372 = vmatpush3.bf16.msra.mxu1 %v399_v17 }
  0x48   :  { %354 = vmatmul.mubr.bf16.vlgmr.msra.gmra.mrb[0].mxu0 %v50_v15 }
 0x11b   :  { %v156_v19 = vpop.f32.mrb[0].mxu0 }
 0x11c   :  { %v157_v20 = vadd.f32 %v301_v18, %v156_v19  ;;  %v355_v21 = vpop.f32.mrb[1].mxu0 }
 0x11d   :  { %v159_v22 = vpop.f32.mrb[2].mxu0 }
 0x11e   :  { %v162_v23 = vmax.f32 %v157_v20, 0.0  ;;  %v356_v24 = vpop.f32.mrb[3].mxu0 }
 0x120   :  { %v163_v25 = vpack.c.bf16 %v162_v23, %v162_v23 }
 0x122   :  { %374 = vmatmul.mubr.bf16.vlgmr.msra.gmra.mrb[0].mxu1 %v163_v25 }
 0x1f5   :  { %v269_v27 = vpop.f32.mrb[0].mxu1 }
 0x1f6   :  { %v270_v28 = vadd.f32 %v310_v26, %v269_v27  ;;  %v375_v29 = vpop.f32.mrb[1].mxu1 }
 0x1f7   :  { %v272_v30 = vpop.f32.mrb[2].mxu1 }
 0x1f8   :  { %275 = vmax.xlane.f32.xlu0 %v270_v28  ;;  %v376_v31 = vpop.f32.mrb[3].mxu1 }
 0x285   :  { %v276_v32 = vpop.xlane.xlu0 %275 }
 0x286   :  { %v277_v33 = vsub.f32 %v270_v28, %v276_v32 }
 0x288   :  { %v278_v34 = vmul.f32 1.442695, %v277_v33 }
 0x28a   :  { %400 = vpow2.f32 %v278_v34 }
 0x294   :  { %v401_v35 = vpop.eup %400 }
 0x295   :  { %280 = vadd.xlane.f32.xlu0 %v401_v35 }
 0x322   :  { %v281_v36 = vpop.xlane.xlu0 %280 }
 0x323   :  { %402 = vrcp.f32 %v281_v36 }
 0x32d   :  { %v403_v37 = vpop.eup %402 }
 0x32e   :  { %v283_v38 = vmul.f32 %v403_v37, %v401_v35 }
 0x330   :  { %284 = vst [vmem:[#allocation7] sm:$0xff] %v283_v38 }
 0x331   :  { %459 = shalt.err (!%p456_p6)
}
 0x332   :  { %s460_s25 = scalar_lea.hbm %s563_s5, 128 }
 0x333   :  { %p461_p7 = scmp.ne.s32.totalorder %s563_s5, %s460_s25  ;;  %p464_p8 = scmp.lt.u32.totalorder %s460_s25, %s563_s5 }
 0x335   :  { %p466_p9 = pnand %p464_p8, %p461_p7 }
 0x337   :  { %469 = shalt.err (!%p466_p9)
}
 0x338   :  { %294 = dma.vmem_to_hbm [thread:$0]  %s292_s22, 128, %s563_s5, [#allocation4]  }
 0x339   :  { %474 = dma.done.wait [#allocation4], 128  }
 0x33a   :  { %475 = vsyncadd [#allocation4], 4294967168 }
 0x33b   :  { %298 = vsyncpa [#allocation3], 1 }
 0x33c   :  { %299 = vsyncpa [#allocation6], 1 }
 0x33d   :  { %300 = vsyncpa [#allocation4], 1 }

</bundles_post_ra>
